<compile_context>
chip_gen: v7x
topology: tpu7x:2x2x1
jax: 0.10.0
libtpu: 0.0.40
codegen_flags: <defaults>
</compile_context>

<pallas_src>
import jax
import jax.numpy as jnp
from jax.experimental import pallas as pl
from jax.experimental.pallas import tpu as pltpu

INPUT_SIZE = 100
OUTPUT_SIZE = 10

SUBLANE = 8
N_PAD = 128        # padded out_features for a lane-dense weight tile
SMALL_BATCH = 512  # gridless whole-array path up to this many rows
TILE_B = 1024      # max batch tile for the pipelined large-batch path


def _round_up(x, m):
    return (x + m - 1) // m * m


def linear_kernel(x_ref, w_ref, b_ref, o_ref):
    # MXU matmul (K = 100; Mosaic pads/masks the unaligned contraction dim),
    # f32 accumulation, VPU bias add, narrow store of the 10 valid columns.
    acc = jnp.dot(x_ref[...], w_ref[...], preferred_element_type=jnp.float32)
    y = acc + b_ref[...]
    o_ref[...] = y[:, :OUTPUT_SIZE].astype(o_ref.dtype)


def _cost_estimate(batch):
    bytes_accessed = 4 * (batch * INPUT_SIZE          # x read
                          + INPUT_SIZE * N_PAD        # w read
                          + N_PAD                     # b read
                          + batch * OUTPUT_SIZE)      # y write
    return pl.CostEstimate(flops=2 * batch * INPUT_SIZE * OUTPUT_SIZE,
                           transcendentals=0,
                           bytes_accessed=bytes_accessed)


def _linear_whole(x, w_pad, b_pad):
    # Gridless call: whole arrays live in VMEM, a single DMA per operand,
    # no pipeline machinery for a kernel this small.  Whole-array blocks
    # satisfy the (8, 128) rule trivially, so no batch/K padding is needed.
    batch = x.shape[0]
    return pl.pallas_call(
        linear_kernel,
        out_shape=jax.ShapeDtypeStruct((batch, OUTPUT_SIZE), x.dtype),
        in_specs=[
            pl.BlockSpec(memory_space=pltpu.MemorySpace.VMEM),
            pl.BlockSpec(memory_space=pltpu.MemorySpace.VMEM),
            pl.BlockSpec(memory_space=pltpu.MemorySpace.VMEM),
        ],
        out_specs=pl.BlockSpec(memory_space=pltpu.MemorySpace.VMEM),
        cost_estimate=_cost_estimate(batch),
    )(x, w_pad, b_pad)


def _linear_tiled(x, w_pad, b_pad, tb):
    # Large-batch path: tile only the batch dim; W and b map to block (0, 0)
    # for every grid point so they stay resident in VMEM (loaded once).
    # Ragged final block is handled by Pallas (OOB writes are masked).
    batch = x.shape[0]
    return pl.pallas_call(
        linear_kernel,
        out_shape=jax.ShapeDtypeStruct((batch, OUTPUT_SIZE), x.dtype),
        grid=(pl.cdiv(batch, tb),),
        in_specs=[
            pl.BlockSpec((tb, INPUT_SIZE), lambda i: (i, 0)),
            pl.BlockSpec((INPUT_SIZE, N_PAD), lambda i: (0, 0)),
            pl.BlockSpec((1, N_PAD), lambda i: (0, 0)),
        ],
        out_specs=pl.BlockSpec((tb, OUTPUT_SIZE), lambda i: (i, 0)),
        compiler_params=pltpu.CompilerParams(
            dimension_semantics=("parallel",)),
        cost_estimate=_cost_estimate(batch),
    )(x, w_pad, b_pad)


@jax.jit
def linear_pallas(x, w_pad, b_pad):
    """y = x @ W + b with pre-padded, lane-dense params.

    x:     [B, INPUT_SIZE]       f32 (unpadded)
    w_pad: [INPUT_SIZE, 128]     f32 (zero cols >= 10)
    b_pad: [1, 128]              f32 (zero cols >= 10)
    returns [B, OUTPUT_SIZE]     f32
    """
    batch = x.shape[0]
    if batch <= SMALL_BATCH:
        return _linear_whole(x, w_pad, b_pad)
    # Cap the tile at ceil(batch / 2) so the parallel axis has >= 2 grid
    # steps (both v7x TensorCores issue DMAs), up to TILE_B rows per step.
    half = -(-batch // 2)
    tb = min(TILE_B, _round_up(half, SUBLANE))
    return _linear_tiled(x, w_pad, b_pad, tb)


def init_params(key, input_size, output_size):
    # Deterministic init mimicking nn.Linear: U(-1/sqrt(in), 1/sqrt(in)).
    kw, kb = jax.random.split(key)
    bound = 1.0 / jnp.sqrt(jnp.float32(input_size))
    # Torch stores weight as [out, in]; we keep it transposed ([in, out]).
    w = jax.random.uniform(kw, (input_size, output_size), jnp.float32,
                           minval=-bound, maxval=bound)
    b = jax.random.uniform(kb, (output_size,), jnp.float32,
                           minval=-bound, maxval=bound)
    # Pad once at init time to a lane-dense 128-wide N tile (zeros elsewhere).
    w_pad = jnp.zeros((input_size, N_PAD), jnp.float32)
    w_pad = w_pad.at[:, :output_size].set(w)
    b_pad = jnp.zeros((1, N_PAD), jnp.float32)
    b_pad = b_pad.at[0, :output_size].set(b)
    return w, b, w_pad, b_pad


if __name__ == "__main__":
    key = jax.random.PRNGKey(0)
    kx, kp = jax.random.split(key)

    batch = 8
    x = jax.random.normal(kx, (batch, INPUT_SIZE), jnp.float32)
    w, b, w_pad, b_pad = init_params(kp, INPUT_SIZE, OUTPUT_SIZE)

    y = linear_pallas(x, w_pad, b_pad)
    jax.block_until_ready(y)

    # Reference check against plain JAX (unpadded params).
    y_ref = x @ w + b[None, :]
    assert y.shape == (batch, OUTPUT_SIZE)
    assert jnp.allclose(y, y_ref, atol=1e-5, rtol=1e-5)

    print("KERNEL_OK")
</pallas_src>

<mosaic_0001>
module attributes {stable_mosaic.version = 11 : i64} {
  func.func @linear_kernel(%arg0: memref<8x100xf32, #tpu.memory_space<vmem>>, %arg1: memref<100x128xf32, #tpu.memory_space<vmem>>, %arg2: memref<1x128xf32, #tpu.memory_space<vmem>>, %arg3: memref<8x10xf32, #tpu.memory_space<vmem>>) attributes {dimension_semantics = [], scalar_prefetch = 0 : i64, scratch_operands = 0 : i64, tpu.core_type = #tpu.core_type<tc>} {
    %c0 = arith.constant 0 : index
    %c0_0 = arith.constant 0 : index
    %0 = vector.load %arg0[%c0, %c0_0] : memref<8x100xf32, #tpu.memory_space<vmem>>, vector<8x100xf32>
    %c0_1 = arith.constant 0 : index
    %c0_2 = arith.constant 0 : index
    %1 = vector.load %arg1[%c0_1, %c0_2] : memref<100x128xf32, #tpu.memory_space<vmem>>, vector<100x128xf32>
    %cst = arith.constant dense<0.000000e+00> : vector<8x128xf32>
    %2 = tpu.matmul %0, %1, %cst {dimension_numbers = #tpu.dot_dimension_numbers<[1], [0], [0], [1], [0, 0, 1, 1], [], []>} : vector<8x100xf32>, vector<100x128xf32>, vector<8x128xf32> -> vector<8x128xf32>
    %c0_3 = arith.constant 0 : index
    %c0_4 = arith.constant 0 : index
    %3 = vector.load %arg2[%c0_3, %c0_4] : memref<1x128xf32, #tpu.memory_space<vmem>>, vector<1x128xf32>
    %4 = vector.broadcast %3 : vector<1x128xf32> to vector<8x128xf32>
    %5 = arith.addf %2, %4 : vector<8x128xf32>
    %6 = vector.extract_strided_slice %5 {offsets = [0, 0], sizes = [8, 10], strides = [1, 1]} : vector<8x128xf32> to vector<8x10xf32>
    %c0_5 = arith.constant 0 : index
    %c0_6 = arith.constant 0 : index
    %7 = vector.load %arg3[%c0_5, %c0_6] : memref<8x10xf32, #tpu.memory_space<vmem>>, vector<8x10xf32>
    tpu.vector_store %arg3[%c0_5, %c0_6], %6 {strides = array<i32>} : memref<8x10xf32, #tpu.memory_space<vmem>>, vector<8x10xf32>,
    return
  }
}

</mosaic_0001>

<bundles_post_ra>
// kernel: linear_pallas.1
= control target key start
LH: loop header
LB: loop body
LE: loop exit
PB: predicated region body
PF: predicated region fallthrough
CT: control target
= control target key end

     0   :  { %8 = vsyncpa [#allocation3], 0  ;;  %s376_s0 = inlined_call_operand.hbm [shape: f32[8,100], index: 0, kind: input, shape index: {}]   ;;  %s377_s1 = inlined_call_operand.hbm [shape: f32[100,128], index: 1, kind: input, shape index: {}]   ;;  %s378_s2 = inlined_call_operand.vmem [shape: f32[1,128], index: 2, kind: input, shape index: {}]   ;;  %s379_s3 = inlined_call_operand.hbm [shape: f32[8,10], index: 3, kind: output, shape index: {}]  }
   0x1   :  { %9 = vsyncpa [#allocation6], 0 }
   0x2   :  { %10 = vsyncpa [#allocation4], 0  ;;  %s302_s12 = smov [#allocation2]   ;;  %s303_s14 = smov [#allocation5]  }
   0x3   :  { %s17_s13 = sshll.u32 %s302_s12, 4  ;;  %s26_s15 = sshll.u32 %s303_s14, 4  ;;  %s18_s13 = int_to_ptr.vmem [resolvable:$true] %s17_s13  ;;  %s330_s15 = int_to_ptr.vmem [resolvable:$true] %s26_s15 }
   0x4   :  { %s230_s18 = scalar_lea.hbm %s376_s0, 128 }
   0x5   :  { %p231_p0 = scmp.ne.s32.totalorder %s376_s0, %s230_s18  ;;  %p234_p1 = scmp.lt.u32.totalorder %s230_s18, %s376_s0 }
   0x7   :  { %p236_p2 = pnand %p234_p1, %p231_p0 }
   0x9   :  { %239 = shalt.err (!%p236_p2)
}
   0xa   :  { %s240_s23 = scalar_lea.vmem %s18_s13, 128  ;;  %p245_p4 = scmp.lt.s32.totalorder %s18_s13, %s18_s13 }
   0xb   :  { %p241_p3 = scmp.ne.s32.totalorder %s18_s13, %s240_s23  ;;  %p246_p5 = scmp.lt.s32.totalorder %s240_s23, %s240_s23 }
   0xd   :  { %p247_p6 = por %p246_p5, %p245_p4 }
   0xf   :  { %p248_p7 = pnand %p247_p6, %p241_p3 }
  0x11   :  { %251 = shalt.err (!%p248_p7)
}
  0x12   :  { %20 = dma.hbm_to_vmem [thread:$0]  %s376_s0, 128, %s18_s13, [#allocation3]  }
  0x13   :  { %s252_s28 = scalar_lea.hbm %s377_s1, 1664 }
  0x14   :  { %p253_p8 = scmp.ne.s32.totalorder %s377_s1, %s252_s28  ;;  %p256_p9 = scmp.lt.u32.totalorder %s252_s28, %s377_s1 }
  0x16   :  { %p258_p10 = pnand %p256_p9, %p253_p8 }
  0x18   :  { %261 = shalt.err (!%p258_p10)
}
  0x19   :  { %s262_s6 = scalar_lea.vmem %s330_s15, 1664  ;;  %p267_p12 = scmp.lt.s32.totalorder %s330_s15, %s330_s15 }
  0x1a   :  { %p263_p11 = scmp.ne.s32.totalorder %s330_s15, %s262_s6  ;;  %p268_p13 = scmp.lt.s32.totalorder %s262_s6, %s262_s6 }
  0x1c   :  { %p269_p0 = por %p268_p13, %p267_p12 }
  0x1e   :  { %p270_p1 = pnand %p269_p0, %p263_p11 }
  0x20   :  { %273 = shalt.err (!%p270_p1)
}
  0x21   :  { %s304_s0 = smov 128   ;;  %s305_s7 = smov 8  }
  0x22   :  { %32 = dma.hbm_to_vmem [thread:$0]  %s377_s1, 1664, %s330_s15, [#allocation6], %s304_s0, %s304_s0, %s305_s7  }
  0x23   :  { %296 = dma.done.wait [#allocation3], 128  }
  0x24   :  { %297 = vsyncadd [#allocation3], 4294967168 }
  0x25   :  { %298 = dma.done.wait [#allocation6], 1664  }
  0x26   :  { %299 = vsyncadd [#allocation6], 4294965632  ;;  %v306_v0 = vmov 0.0|0.0   ;;  %vm307_vm0 = vmmov 0   ;;  %v308_v1 = vmov 0.0   ;;  %v42_v2 = vld [vmem:[#allocation5] sm:$0xff] }
  0x27   :  { %204 = vmatprep.subr.bf16.mxu0 %v306_v0  ;;  %201 = vmatprep.mubr.msk.f32.mxu0 %vm307_vm0, %v308_v1  ;;  %v43_v3 = vld [vmem:[#allocation5 + $0x8] sm:$0xff]  ;;  %v44_v4 = vld [vmem:[#allocation5 + $0x10] sm:$0xff]  ;;  %v45_v6 = vld [vmem:[#allocation5 + $0x18] sm:$0xff]  ;;  %vm66_vm1 = vcmask 1043456   ;;  %vm62_vm2 = vcmask 818176   ;;  %s309_s11 = smov [#allocation7]  }
  0x28   :  { %v205_v5 = vpack.c.bf16 %v43_v3, %v42_v2  ;;  %v208_v7 = vpack.c.bf16 %v45_v6, %v44_v4  ;;  %v46_v8 = vld [vmem:[#allocation5 + $0x20] sm:$0xff]  ;;  %v47_v9 = vld [vmem:[#allocation5 + $0x28] sm:$0xff]  ;;  %v48_v11 = vld [vmem:[#allocation5 + $0x30] sm:$0xff]  ;;  %s148_s12 = sshll.u32 %s309_s11, 4  ;;  %vm140_vm3 = vcmask 80896   ;;  %s149_s12 = int_to_ptr.vmem [resolvable:$true] %s148_s12 }
  0x29   :  { %v211_v10 = vpack.c.bf16 %v47_v9, %v46_v8  ;;  %v49_v12 = vld [vmem:[#allocation5 + $0x38] sm:$0xff]  ;;  %v50_v14 = vld [vmem:[#allocation5 + $0x40] sm:$0xff]  ;;  %v51_v15 = vld [vmem:[#allocation5 + $0x48] sm:$0xff]  ;;  %s274_s13 = scalar_lea.vmem %s149_s12, 128  ;;  %p279_p3 = scmp.lt.s32.totalorder %s149_s12, %s149_s12 }
  0x2a   :  { %206 = vmatpush3.bf16.msra.mxu0 %v205_v5  ;;  %v214_v13 = vpack.c.bf16 %v49_v12, %v48_v11  ;;  %v217_v16 = vpack.c.bf16 %v51_v15, %v50_v14  ;;  %v52_v17 = vld [vmem:[#allocation5 + $0x50] sm:$0xff]  ;;  %v53_v18 = vld [vmem:[#allocation5 + $0x58] sm:$0xff]  ;;  %v54_v20 = vld [vmem:[#allocation5 + $0x60] sm:$0xf]  ;;  %p275_p2 = scmp.ne.s32.totalorder %s149_s12, %s274_s13  ;;  %p280_p4 = scmp.lt.s32.totalorder %s274_s13, %s274_s13 }
  0x2b   :  { %207 = vmatprep.subr.bf16.mxu0 %v306_v0  ;;  %v220_v19 = vpack.c.bf16 %v53_v18, %v52_v17  ;;  %v41_v21 = vld [vmem:[#allocation2] sm:$0xff] }
  0x2c   :  { %v158_v22 = vld [vmem:[%s378_s2] ss:$0 sm:$0xff]  ;;  %p281_p5 = por %p280_p4, %p279_p3 }
  0x2e   :  { %209 = vmatpush3.bf16.msra.mxu0 %v208_v7  ;;  %p282_p6 = pnand %p281_p5, %p275_p2 }
  0x2f   :  { %210 = vmatprep.subr.bf16.mxu0 %v306_v0 }
  0x32   :  { %212 = vmatpush3.bf16.msra.mxu0 %v211_v10 }
  0x33   :  { %213 = vmatprep.subr.bf16.mxu0 %v306_v0 }
  0x36   :  { %215 = vmatpush3.bf16.msra.mxu0 %v214_v13 }
  0x37   :  { %216 = vmatprep.subr.bf16.mxu0 %v306_v0 }
  0x3a   :  { %218 = vmatpush3.bf16.msra.mxu0 %v217_v16 }
  0x3b   :  { %219 = vmatprep.subr.bf16.mxu0 %v306_v0 }
  0x3e   :  { %221 = vmatpush3.bf16.msra.mxu0 %v220_v19 }
  0x3f   :  { %199 = vmatprep.subr.mxu0 %v308_v1 }
  0x42   :  { %200 = vmatpush3.msk.msra.mxu0 %vm66_vm1, %v54_v20 }
  0x43   :  { %202 = vmatmul.mubr.msk.f32.vlgmr.msra.gmra.mrb[0].mxu0 %vm62_vm2, %v41_v21 }
 0x116   :  { %v136_v23 = vpop.f32.mrb[0].mxu0 }
 0x117   :  { %v137_v24 = vadd.f32 %v158_v22, %v136_v23  ;;  %v203_v25 = vpop.f32.mrb[1].mxu0 }
 0x119   :  { %141 = vst.msk [vmem:[#allocation7] sm:$0xff] %vm140_vm3, %v137_v24 }
 0x11a   :  { %285 = shalt.err (!%p282_p6)
}
 0x11b   :  { %s286_s16 = scalar_lea.hbm %s379_s3, 128 }
 0x11c   :  { %p287_p7 = scmp.ne.s32.totalorder %s379_s3, %s286_s16  ;;  %p290_p8 = scmp.lt.u32.totalorder %s286_s16, %s379_s3 }
 0x11e   :  { %p292_p9 = pnand %p290_p8, %p287_p7 }
 0x120   :  { %295 = shalt.err (!%p292_p9)
}
 0x121   :  { %151 = dma.vmem_to_hbm [thread:$0]  %s149_s12, 128, %s379_s3, [#allocation4]  }
 0x122   :  { %300 = dma.done.wait [#allocation4], 128  }
 0x123   :  { %301 = vsyncadd [#allocation4], 4294967168 }
 0x124   :  { %155 = vsyncpa [#allocation3], 1 }
 0x125   :  { %156 = vsyncpa [#allocation6], 1 }
 0x126   :  { %157 = vsyncpa [#allocation4], 1 }

</bundles_post_ra>
